<compile_context>
chip_gen: v7x
topology: tpu7x:2x2x1
jax: 0.10.0
libtpu: 0.0.40
codegen_flags: <defaults>
</compile_context>

<pallas_src>
import functools
import math

import jax
import jax.numpy as jnp
from jax.experimental import pallas as pl
from jax.experimental.pallas import tpu as pltpu


def _channel_attention_kernel(x_ref, w1t_ref, w2t_ref, o_ref,
                              max_acc, sum_acc, *,
                              inv_hw, hw_total, t_hw, needs_mask):
    # x_ref:   (tb, C, t_hw)  input dtype
    # w1t_ref: (C, Cr)        Conv2d(C, C//r, 1).weight reshaped+transposed
    # w2t_ref: (Cr, C)        Conv2d(C//r, C, 1).weight reshaped+transposed
    # o_ref:   (tb, C)
    hw = pl.program_id(1)

    @pl.when(hw == 0)
    def _init():
        max_acc[...] = jnp.full(max_acc.shape, -jnp.inf, dtype=max_acc.dtype)
        sum_acc[...] = jnp.zeros(sum_acc.shape, dtype=sum_acc.dtype)

    x = x_ref[...]                                             # (tb, C, t_hw)
    if needs_mask:
        # Tail block extends past HW: mask the invalid lanes (cheap VPU select,
        # negligible vs. the HBM stream).
        lane = jax.lax.broadcasted_iota(jnp.int32, x.shape, dimension=2)
        valid = (hw * t_hw + lane) < hw_total
        x_max = jnp.where(valid, x, jnp.full_like(x, -jnp.inf))
        x_sum = jnp.where(valid, x, jnp.zeros_like(x))
    else:
        x_max = x
        x_sum = x

    # Max in input dtype (no full-tile upcast); sum accumulated in f32.
    max_acc[...] = jnp.maximum(max_acc[...], jnp.max(x_max, axis=-1))
    sum_acc[...] = sum_acc[...] + jnp.sum(x_sum, axis=-1, dtype=jnp.float32)

    @pl.when(hw == pl.num_programs(1) - 1)
    def _finalize():
        pooled_max = max_acc[...].astype(jnp.float32)          # (tb, C)
        pooled_avg = sum_acc[...] * inv_hw                     # (tb, C)
        w1t = w1t_ref[...].astype(jnp.float32)
        w2t = w2t_ref[...].astype(jnp.float32)
        h_max = jnp.maximum(
            jnp.dot(pooled_max, w1t, preferred_element_type=jnp.float32), 0.0)
        h_avg = jnp.maximum(
            jnp.dot(pooled_avg, w1t, preferred_element_type=jnp.float32), 0.0)
        # SE(max)+SE(avg): the second conv is linear, so sum the hidden
        # activations and run the second matmul once (no concatenate).
        y = jnp.dot(h_max + h_avg, w2t, preferred_element_type=jnp.float32)
        o_ref[...] = jax.nn.sigmoid(y).astype(o_ref.dtype)


def _vmem_capacity_bytes():
    """Generation-aware VMEM capacity (128 MiB v5e/v6e, 64 MiB v7x)."""
    try:
        return int(pltpu.get_tpu_info().vmem_capacity_bytes)
    except Exception:
        return 64 * 1024 * 1024           # conservative fallback (v7x-sized)


def _pick_batch_tile(batch):
    # Output block is (tb, C): its sublane dim tb must be a multiple of 8 or
    # equal to the full batch.  Prefer >= 2 batch tiles so the "parallel" grid
    # axis can be sharded across v7x's two TensorCores; cap tb at 32 so the
    # per-tile scratch/output stays small.
    for tb in (32, 24, 16, 8):
        if batch % tb == 0 and batch // tb >= 2:
            return tb
    return batch                          # single tile (block == full dim)


def _pick_hw_tile(hw_total, tb, channels, itemsize, per_buffer_budget):
    # Largest lane-aligned (multiple-of-128) t_hw whose single-buffer x tile
    # fits the per-buffer budget.  HW does NOT need to be divisible by t_hw
    # (the kernel masks the tail block); block sizes are balanced across the
    # cdiv grid so the tail block is not tiny.
    bytes_per_lane = max(1, tb * channels * itemsize)
    max_t = per_buffer_budget // bytes_per_lane
    if max_t >= hw_total or hw_total <= 128:
        return hw_total                   # single block == full dim (legal)
    max_t = max(128, (max_t // 128) * 128)
    num_blocks = -(-hw_total // max_t)
    t_hw = ((-(-hw_total // num_blocks) + 127) // 128) * 128
    return min(t_hw, max_t)


def prepare_weights(w1, w2):
    """Pre-transpose the 1x1-conv weights once at model setup.

    w1: (Cr, C, 1, 1) -> w1t: (C, Cr);  w2: (C, Cr, 1, 1) -> w2t: (Cr, C)
    """
    cr, c = w1.shape[0], w1.shape[1]
    return w1.reshape(cr, c).T, w2.reshape(c, cr).T


def channel_attention(x, w1t, w2t, *, batch_tile=None, hw_tile=None,
                      x_buffers=2):
    """x: (B, C, H, W) NCHW; w1t: (C, Cr), w2t: (Cr, C) from prepare_weights."""
    assert jnp.issubdtype(x.dtype, jnp.floating), "float inputs only"
    B, C, H, W = x.shape
    Cr = w1t.shape[1]
    HW = H * W
    x_flat = x.reshape(B, C, HW)          # contiguous reshape, no copy

    vmem_cap = _vmem_capacity_bytes()
    # Per-buffer budget ~capacity/6: double-buffered x stream stays around a
    # third of VMEM (e.g. ~21 MiB/buffer on 128 MiB parts, ~10 MiB on v7x).
    per_buffer_budget = max(4 * 1024 * 1024, vmem_cap // 6)

    tb = batch_tile if batch_tile is not None else _pick_batch_tile(B)
    assert B % tb == 0 and (tb == B or tb % 8 == 0), "illegal batch tile"

    if hw_tile is not None:
        t_hw = min(hw_tile, HW)
    else:
        t_hw = _pick_hw_tile(HW, tb, C, x.dtype.itemsize, per_buffer_budget)
    assert t_hw == HW or t_hw % 128 == 0, "hw tile must be 128-aligned or full"

    grid_hw = -(-HW // t_hw)
    needs_mask = (HW % t_hw) != 0
    grid = (B // tb, grid_hw)

    # Explicit scoped-VMEM budget derived from the chip's capacity: buffered x
    # stream + resident weights + output + accumulators, with headroom.
    x_bytes = x_buffers * tb * C * t_hw * x.dtype.itemsize
    w_bytes = 2 * (C * Cr + Cr * C) * w1t.dtype.itemsize
    o_bytes = 2 * tb * C * x.dtype.itemsize
    s_bytes = tb * C * (x.dtype.itemsize + 4)
    need = x_bytes + w_bytes + o_bytes + s_bytes
    vmem_limit = int(min(vmem_cap * 9 // 10,
                         max(32 * 1024 * 1024, int(1.3 * need))))

    kernel = functools.partial(
        _channel_attention_kernel,
        inv_hw=float(1.0 / HW), hw_total=HW, t_hw=t_hw, needs_mask=needs_mask)

    x_spec_kwargs = {}
    if x_buffers != 2:
        x_spec_kwargs["pipeline_mode"] = pl.Buffered(x_buffers)

    cost = pl.CostEstimate(
        flops=int(2 * B * C * HW + 12 * B * C * Cr),
        transcendentals=int(B * C),
        bytes_accessed=int((B * C * HW + B * C) * x.dtype.itemsize
                           + 2 * C * Cr * w1t.dtype.itemsize),
    )

    out = pl.pallas_call(
        kernel,
        out_shape=jax.ShapeDtypeStruct((B, C), x.dtype),
        grid_spec=pltpu.PrefetchScalarGridSpec(
            num_scalar_prefetch=0,
            grid=grid,
            in_specs=[
                pl.BlockSpec((tb, C, t_hw), lambda b, hw: (b, 0, hw),
                             **x_spec_kwargs),
                pl.BlockSpec((C, Cr), lambda b, hw: (0, 0)),   # weights resident
                pl.BlockSpec((Cr, C), lambda b, hw: (0, 0)),   # weights resident
            ],
            out_specs=pl.BlockSpec((tb, C), lambda b, hw: (b, 0)),
            scratch_shapes=[
                pltpu.VMEM((tb, C), x.dtype),       # running max (input dtype)
                pltpu.VMEM((tb, C), jnp.float32),   # running sum (f32)
            ],
        ),
        compiler_params=pltpu.CompilerParams(
            dimension_semantics=("parallel", "arbitrary"),
            vmem_limit_bytes=vmem_limit,
        ),
        cost_estimate=cost,
    )(x_flat, w1t, w2t)
    return out.reshape(B, C, 1, 1)


def _reference(x, w1, w2):
    B, C, H, W = x.shape
    Cr = w1.shape[0]
    w1m = w1.reshape(Cr, C)
    w2m = w2.reshape(C, Cr)
    xf = x.reshape(B, C, H * W)
    max_pool = jnp.max(xf, axis=-1)
    avg_pool = jnp.mean(xf, axis=-1)

    def se(v):
        return jnp.maximum(v @ w1m.T, 0.0) @ w2m.T

    return jax.nn.sigmoid(se(max_pool) + se(avg_pool)).reshape(B, C, 1, 1)


if __name__ == "__main__":
    # Small shapes consistent with the module: channel=64, reduction=16 -> Cr=4.
    C, reduction = 64, 16
    Cr = C // reduction

    key = jax.random.PRNGKey(0)
    kx, k1, k2, kx2, kx3 = jax.random.split(key, 5)

    # Conv2d-default-like init (uniform with bound 1/sqrt(fan_in)).
    bound1 = 1.0 / jnp.sqrt(C)
    bound2 = 1.0 / jnp.sqrt(Cr)
    w1 = jax.random.uniform(k1, (Cr, C, 1, 1), jnp.float32, -bound1, bound1)
    w2 = jax.random.uniform(k2, (C, Cr, 1, 1), jnp.float32, -bound2, bound2)
    w1t, w2t = prepare_weights(w1, w2)   # done once at "model setup"

    # 1) Default tiling, 128-multiple HW (single HW block at this size).
    x = jax.random.normal(kx, (2, C, 16, 16), dtype=jnp.float32)
    ref = _reference(x, w1, w2)
    out = jax.block_until_ready(channel_attention(x, w1t, w2t))
    assert out.shape == (2, C, 1, 1)
    assert jnp.allclose(out, ref, atol=1e-5, rtol=1e-5)

    # 2) Force multiple HW grid steps (streamed reduction, no tail mask).
    out_tiled = jax.block_until_ready(channel_attention(x, w1t, w2t, hw_tile=128))
    assert jnp.allclose(out_tiled, ref, atol=1e-5, rtol=1e-5)

    # 3) ResNet-like non-128-multiple spatial size (HW=196): tail-masked block.
    x2 = jax.random.normal(kx2, (2, C, 14, 14), dtype=jnp.float32)
    ref2 = _reference(x2, w1, w2)
    out2 = jax.block_until_ready(channel_attention(x2, w1t, w2t, hw_tile=128))
    assert jnp.allclose(out2, ref2, atol=1e-5, rtol=1e-5)

    # 4) Larger batch: exercises the >=2 parallel batch tiles path (tb=8).
    x3 = jax.random.normal(kx3, (16, C, 14, 14), dtype=jnp.float32)
    ref3 = _reference(x3, w1, w2)
    out3 = jax.block_until_ready(channel_attention(x3, w1t, w2t))
    assert out3.shape == (16, C, 1, 1)
    assert jnp.allclose(out3, ref3, atol=1e-5, rtol=1e-5)

    print("KERNEL_OK")
</pallas_src>

<mosaic_0001>
module attributes {stable_mosaic.version = 11 : i64} {
  func.func @_channel_attention_kernel(%arg0: i32, %arg1: i32, %arg2: memref<2x64x256xf32, #tpu.memory_space<vmem>>, %arg3: memref<64x4xf32, #tpu.memory_space<vmem>>, %arg4: memref<4x64xf32, #tpu.memory_space<vmem>>, %arg5: memref<2x64xf32, #tpu.memory_space<vmem>>, %arg6: memref<2x64xf32, #tpu.memory_space<vmem>>, %arg7: memref<2x64xf32, #tpu.memory_space<vmem>>) attributes {dimension_semantics = [#tpu.dimension_semantics<parallel>, #tpu.dimension_semantics<arbitrary>], iteration_bounds = array<i64: 1, 1>, scalar_prefetch = 0 : i64, scratch_operands = 2 : i64, tpu.core_type = #tpu.core_type<tc>, window_params = [{transform_indices = @transform_0, window_bounds = array<i64: 2, 64, 256>}, {pipeline_mode = #tpu.pipeline_mode<synchronous>, transform_indices = @transform_1, window_bounds = array<i64: 64, 4>}, {pipeline_mode = #tpu.pipeline_mode<synchronous>, transform_indices = @transform_2, window_bounds = array<i64: 4, 64>}, {transform_indices = @transform_3, window_bounds = array<i64: 2, 64>}]} {
    %c0_i32 = arith.constant 0 : i32
    %0 = arith.cmpi eq, %arg1, %c0_i32 : i32
    %1 = arith.extui %0 : i1 to i32
    %c0_i32_0 = arith.constant 0 : i32
    %2 = arith.cmpi ne, %1, %c0_i32_0 : i32
    scf.if %2 {
      %cst_14 = arith.constant 0xFF800000 : f32
      %15 = vector.broadcast %cst_14 : f32 to vector<2x64xf32>
      %c0_15 = arith.constant 0 : index
      %c0_16 = arith.constant 0 : index
      %16 = vector.load %arg6[%c0_15, %c0_16] : memref<2x64xf32, #tpu.memory_space<vmem>>, vector<2x64xf32>
      tpu.vector_store %arg6[%c0_15, %c0_16], %15 {strides = array<i32>} : memref<2x64xf32, #tpu.memory_space<vmem>>, vector<2x64xf32>,
      %cst_17 = arith.constant 0.000000e+00 : f32
      %17 = vector.broadcast %cst_17 : f32 to vector<2x64xf32>
      %c0_18 = arith.constant 0 : index
      %c0_19 = arith.constant 0 : index
      %18 = vector.load %arg7[%c0_18, %c0_19] : memref<2x64xf32, #tpu.memory_space<vmem>>, vector<2x64xf32>
      tpu.vector_store %arg7[%c0_18, %c0_19], %17 {strides = array<i32>} : memref<2x64xf32, #tpu.memory_space<vmem>>, vector<2x64xf32>,
    } else {
    }
    %c0 = arith.constant 0 : index
    %c0_1 = arith.constant 0 : index
    %c0_2 = arith.constant 0 : index
    %3 = vector.load %arg2[%c0, %c0_1, %c0_2] : memref<2x64x256xf32, #tpu.memory_space<vmem>>, vector<2x64x256xf32>
    %c0_3 = arith.constant 0 : index
    %c0_4 = arith.constant 0 : index
    %4 = vector.load %arg6[%c0_3, %c0_4] : memref<2x64xf32, #tpu.memory_space<vmem>>, vector<2x64xf32>
    %cst = arith.constant dense<0xFF800000> : vector<2x64xf32>
    %5 = vector.multi_reduction <maximumf>, %3, %cst [2] : vector<2x64x256xf32> to vector<2x64xf32>
    %6 = arith.maximumf %4, %5 : vector<2x64xf32>
    %c0_5 = arith.constant 0 : index
    %c0_6 = arith.constant 0 : index
    %7 = vector.load %arg6[%c0_5, %c0_6] : memref<2x64xf32, #tpu.memory_space<vmem>>, vector<2x64xf32>
    tpu.vector_store %arg6[%c0_5, %c0_6], %6 {strides = array<i32>} : memref<2x64xf32, #tpu.memory_space<vmem>>, vector<2x64xf32>,
    %c0_7 = arith.constant 0 : index
    %c0_8 = arith.constant 0 : index
    %8 = vector.load %arg7[%c0_7, %c0_8] : memref<2x64xf32, #tpu.memory_space<vmem>>, vector<2x64xf32>
    %cst_9 = arith.constant dense<0.000000e+00> : vector<2x64xf32>
    %9 = vector.multi_reduction <add>, %3, %cst_9 [2] : vector<2x64x256xf32> to vector<2x64xf32>
    %10 = arith.addf %8, %9 : vector<2x64xf32>
    %c0_10 = arith.constant 0 : index
    %c0_11 = arith.constant 0 : index
    %11 = vector.load %arg7[%c0_10, %c0_11] : memref<2x64xf32, #tpu.memory_space<vmem>>, vector<2x64xf32>
    tpu.vector_store %arg7[%c0_10, %c0_11], %10 {strides = array<i32>} : memref<2x64xf32, #tpu.memory_space<vmem>>, vector<2x64xf32>,
    %c0_i32_12 = arith.constant 0 : i32
    %12 = arith.cmpi eq, %arg1, %c0_i32_12 : i32
    %13 = arith.extui %12 : i1 to i32
    %c0_i32_13 = arith.constant 0 : i32
    %14 = arith.cmpi ne, %13, %c0_i32_13 : i32
    scf.if %14 {
      %c0_14 = arith.constant 0 : index
      %c0_15 = arith.constant 0 : index
      %15 = vector.load %arg6[%c0_14, %c0_15] : memref<2x64xf32, #tpu.memory_space<vmem>>, vector<2x64xf32>
      %c0_16 = arith.constant 0 : index
      %c0_17 = arith.constant 0 : index
      %16 = vector.load %arg7[%c0_16, %c0_17] : memref<2x64xf32, #tpu.memory_space<vmem>>, vector<2x64xf32>
      %cst_18 = arith.constant 3.906250e-03 : f32
      %17 = vector.broadcast %cst_18 : f32 to vector<2x64xf32>
      %18 = arith.mulf %16, %17 : vector<2x64xf32>
      %c0_19 = arith.constant 0 : index
      %c0_20 = arith.constant 0 : index
      %19 = vector.load %arg3[%c0_19, %c0_20] : memref<64x4xf32, #tpu.memory_space<vmem>>, vector<64x4xf32>
      %c0_21 = arith.constant 0 : index
      %c0_22 = arith.constant 0 : index
      %20 = vector.load %arg4[%c0_21, %c0_22] : memref<4x64xf32, #tpu.memory_space<vmem>>, vector<4x64xf32>
      %cst_23 = arith.constant dense<0.000000e+00> : vector<2x4xf32>
      %21 = tpu.matmul %15, %19, %cst_23 {dimension_numbers = #tpu.dot_dimension_numbers<[1], [0], [0], [1], [0, 0, 1, 1], [], []>} : vector<2x64xf32>, vector<64x4xf32>, vector<2x4xf32> -> vector<2x4xf32>
      %cst_24 = arith.constant 0.000000e+00 : f32
      %22 = vector.broadcast %cst_24 : f32 to vector<2x4xf32>
      %23 = arith.maximumf %21, %22 : vector<2x4xf32>
      %cst_25 = arith.constant dense<0.000000e+00> : vector<2x4xf32>
      %24 = tpu.matmul %18, %19, %cst_25 {dimension_numbers = #tpu.dot_dimension_numbers<[1], [0], [0], [1], [0, 0, 1, 1], [], []>} : vector<2x64xf32>, vector<64x4xf32>, vector<2x4xf32> -> vector<2x4xf32>
      %cst_26 = arith.constant 0.000000e+00 : f32
      %25 = vector.broadcast %cst_26 : f32 to vector<2x4xf32>
      %26 = arith.maximumf %24, %25 : vector<2x4xf32>
      %27 = arith.addf %23, %26 : vector<2x4xf32>
      %cst_27 = arith.constant dense<0.000000e+00> : vector<2x64xf32>
      %28 = tpu.matmul %27, %20, %cst_27 {dimension_numbers = #tpu.dot_dimension_numbers<[1], [0], [0], [1], [0, 0, 1, 1], [], []>} : vector<2x4xf32>, vector<4x64xf32>, vector<2x64xf32> -> vector<2x64xf32>
      %29 = arith.negf %28 : vector<2x64xf32>
      %30 = math.exp %29 : vector<2x64xf32>
      %cst_28 = arith.constant 1.000000e+00 : f32
      %31 = vector.broadcast %cst_28 : f32 to vector<2x64xf32>
      %32 = arith.addf %31, %30 : vector<2x64xf32>
      %33 = arith.divf %31, %32 : vector<2x64xf32>
      %c0_29 = arith.constant 0 : index
      %c0_30 = arith.constant 0 : index
      %34 = vector.load %arg5[%c0_29, %c0_30] : memref<2x64xf32, #tpu.memory_space<vmem>>, vector<2x64xf32>
      tpu.vector_store %arg5[%c0_29, %c0_30], %33 {strides = array<i32>} : memref<2x64xf32, #tpu.memory_space<vmem>>, vector<2x64xf32>,
    } else {
    }
    return
  }
  func.func @transform_0(%arg0: i32, %arg1: i32) -> (i32, i32, i32) {
    %c0_i32 = arith.constant 0 : i32
    %c0_i32_0 = arith.constant 0 : i32
    return %arg0, %c0_i32, %arg1 : i32, i32, i32
  }
  func.func @transform_1(%arg0: i32, %arg1: i32) -> (i32, i32) {
    %c0_i32 = arith.constant 0 : i32
    %c0_i32_0 = arith.constant 0 : i32
    %c0_i32_1 = arith.constant 0 : i32
    return %c0_i32, %c0_i32_0 : i32, i32
  }
  func.func @transform_2(%arg0: i32, %arg1: i32) -> (i32, i32) {
    %c0_i32 = arith.constant 0 : i32
    %c0_i32_0 = arith.constant 0 : i32
    %c0_i32_1 = arith.constant 0 : i32
    return %c0_i32, %c0_i32_0 : i32, i32
  }
  func.func @transform_3(%arg0: i32, %arg1: i32) -> (i32, i32) {
    %c0_i32 = arith.constant 0 : i32
    %c0_i32_0 = arith.constant 0 : i32
    return %arg0, %c0_i32 : i32, i32
  }
}

</mosaic_0001>

<bundles_post_ra>
// kernel: tpu_custom_call.1
= control target key start
LH: loop header
LB: loop body
LE: loop exit
PB: predicated region body
PF: predicated region fallthrough
CT: control target
= control target key end

     0   :  { %8 = vsyncpa [#allocation5], 0  ;;  %s1021_s0 = inlined_call_operand.hbm [shape: f32[2,64,256], index: 0, kind: input, shape index: {}]   ;;  %s1022_s1 = inlined_call_operand.vmem [shape: f32[64,4], index: 1, kind: input, shape index: {}]   ;;  %s1023_s2 = inlined_call_operand.vmem [shape: f32[4,64], index: 2, kind: input, shape index: {}]   ;;  %s1024_s3 = inlined_call_operand.hbm [shape: f32[2,64], index: 3, kind: output, shape index: {}]  }
   0x1   :  { %9 = vsyncpa [#allocation6], 0  ;;  %s797_s12 = smov [#allocation4]   ;;  %s749_s16 = scalar_lea.hbm %s1021_s0, 4096 }
   0x2   :  { %s15_s13 = sshll.u32 %s797_s12, 4  ;;  %p750_p0 = scmp.ne.s32.totalorder %s1021_s0, %s749_s16  ;;  %s16_s13 = int_to_ptr.vmem [resolvable:$true] %s15_s13 }
   0x3   :  { %p753_p1 = scmp.lt.u32.totalorder %s749_s16, %s1021_s0 }
   0x5   :  { %p755_p2 = pnand %p753_p1, %p750_p0 }
   0x7   :  { %758 = shalt.err (!%p755_p2)
}
   0x8   :  { %s759_s21 = scalar_lea.vmem %s16_s13, 4096  ;;  %p764_p4 = scmp.lt.s32.totalorder %s16_s13, %s16_s13 }
   0x9   :  { %p760_p3 = scmp.ne.s32.totalorder %s16_s13, %s759_s21  ;;  %p765_p5 = scmp.lt.s32.totalorder %s759_s21, %s759_s21 }
   0xb   :  { %p766_p6 = por %p765_p5, %p764_p4 }
   0xd   :  { %p767_p7 = pnand %p766_p6, %p760_p3 }
   0xf   :  { %770 = shalt.err (!%p767_p7)
}
  0x10   :  { %s798_s22 = smov 256   ;;  %s799_s23 = smov 16  }
  0x11   :  { %21 = dma.hbm_to_vmem [thread:$0]  %s1021_s0, 4096, %s16_s13, [#allocation5], %s798_s22, %s798_s22, %s799_s23  }
  0x12   :  { %793 = dma.done.wait [#allocation5], 4096  }
  0x13   :  { %794 = vsyncadd [#allocation5], 4294963200  ;;  %v52_v0 = vld [vmem:[#allocation4 + $0x80] sm:$0xff]  ;;  %v53_v1 = vld [vmem:[#allocation4 + $0x88] sm:$0xff]  ;;  %vm33_vm0 = vcmask 517120   ;;  %vm803_vm1 = vmmov 0  }
  0x14   :  { %v36_v2 = vld [vmem:[#allocation4] sm:$0xff]  ;;  %v258_v3 = vadd.f32 %v53_v1, %v52_v0  ;;  %v37_v4 = vld [vmem:[#allocation4 + $0x8] sm:$0xff]  ;;  %v54_v5 = vld [vmem:[#allocation4 + $0x90] sm:$0xff]  ;;  %v93_v21 = vmax.f32 %v52_v0, %v53_v1  ;;  %v800_v0 = vmov 0.0   ;;  %vm144_vm2 = vcmask 130112   ;;  %s804_s15 = smov [#allocation7]  }
  0x15   :  { %v55_v6 = vld [vmem:[#allocation4 + $0x98] sm:$0xff]  ;;  %v234_v7 = vadd.f32 %v37_v4, %v36_v2  ;;  %v38_v8 = vld [vmem:[#allocation4 + $0x10] sm:$0xff]  ;;  %v56_v12 = vld [vmem:[#allocation4 + $0xa0] sm:$0xff]  ;;  %v69_v19 = vmax.f32 %v36_v2, %v37_v4  ;;  %35 = vst.msk [vmem:[#allocation3] sm:$0x3] %vm33_vm0, %v800_v0  ;;  %v801_v4 = vmov 0.0|0.0   ;;  %705 = vmatprep.mubr.msk.f32.mxu1 %vm803_vm1, %v800_v0  ;;  %686 = vmatprep.mubr.msk.f32.mxu0 %vm803_vm1, %v800_v0 }
  0x16   :  { %v39_v9 = vld [vmem:[#allocation4 + $0x18] sm:$0xff]  ;;  %259 = vadd.xlane.f32.xlu1 %v258_v3  ;;  %v261_v10 = vadd.f32 %v55_v6, %v54_v5  ;;  %v57_v13 = vld [vmem:[#allocation4 + $0xa8] sm:$0xff]  ;;  %v40_v14 = vld [vmem:[#allocation4 + $0x20] sm:$0xff]  ;;  %v96_v20 = vmax.f32 %v54_v5, %v55_v6  ;;  %725 = vmatprep.subr.bf16.mxu1 %v801_v4  ;;  %vm151_vm3 = vcmask 195712   ;;  %vm158_vm4 = vcmask 261312  }
  0x17   :  { %235 = vadd.xlane.f32.xlu0 %v234_v7  ;;  %v237_v11 = vadd.f32 %v39_v9, %v38_v8  ;;  %v41_v15 = vld [vmem:[#allocation4 + $0x28] sm:$0xff]  ;;  %v264_v16 = vadd.f32 %v57_v13, %v56_v12  ;;  %v72_v18 = vmax.f32 %v38_v8, %v39_v9  ;;  %v58_v22 = vld [vmem:[#allocation4 + $0xb0] sm:$0xff]  ;;  %v59_v23 = vld [vmem:[#allocation4 + $0xb8] sm:$0xff]  ;;  %v99_v28 = vmax.f32 %v56_v12, %v57_v13 }
  0x18   :  { %v240_v17 = vadd.f32 %v41_v15, %v40_v14  ;;  %v42_v24 = vld [vmem:[#allocation4 + $0x30] sm:$0xff]  ;;  %v43_v25 = vld [vmem:[#allocation4 + $0x38] sm:$0xff]  ;;  %v267_v26 = vadd.f32 %v59_v23, %v58_v22  ;;  %v75_v29 = vmax.f32 %v40_v14, %v41_v15  ;;  %v60_v30 = vld [vmem:[#allocation4 + $0xc0] sm:$0xff]  ;;  %v102_v36 = vmax.f32 %v58_v22, %v59_v23  ;;  %713 = vmatprep.subr.bf16.mxu0 %v801_v4 }
  0x19   :  { %v243_v27 = vadd.f32 %v43_v25, %v42_v24  ;;  %v61_v31 = vld [vmem:[#allocation4 + $0xc8] sm:$0xff]  ;;  %v44_v32 = vld [vmem:[#allocation4 + $0x40] sm:$0xff]  ;;  %v78_v37 = vmax.f32 %v42_v24, %v43_v25  ;;  %v62_v38 = vld [vmem:[#allocation4 + $0xd0] sm:$0xff]  ;;  %v802_v8 = vmov -inf   ;;  %vm165_vm5 = vcmask 326912  }
  0x1a   :  { %262 = vadd.xlane.f32.xlu1 %v261_v10  ;;  %v45_v33 = vld [vmem:[#allocation4 + $0x48] sm:$0xff]  ;;  %v270_v34 = vadd.f32 %v61_v31, %v60_v30  ;;  %v63_v39 = vld [vmem:[#allocation4 + $0xd8] sm:$0xff]  ;;  %v46_v40 = vld [vmem:[#allocation4 + $0x50] sm:$0xff]  ;;  %v105_v44 = vmax.f32 %v60_v30, %v61_v31  ;;  %34 = vst.msk [vmem:[#allocation2] sm:$0x3] %vm33_vm0, %v802_v8  ;;  %v133_v31 = vlaneseq  ;;  %vm172_vm6 = vcmask 392512  }
  0x1b   :  { %238 = vadd.xlane.f32.xlu0 %v237_v11  ;;  %v246_v35 = vadd.f32 %v45_v33, %v44_v32  ;;  %v47_v41 = vld [vmem:[#allocation4 + $0x58] sm:$0xff]  ;;  %v273_v42 = vadd.f32 %v63_v39, %v62_v38  ;;  %v81_v45 = vmax.f32 %v44_v32, %v45_v33  ;;  %v64_v46 = vld [vmem:[#allocation4 + $0xe0] sm:$0xff]  ;;  %v65_v47 = vld [vmem:[#allocation4 + $0xe8] sm:$0xff]  ;;  %v108_v52 = vmax.f32 %v62_v38, %v63_v39 }
  0x1c   :  { %v249_v43 = vadd.f32 %v47_v41, %v46_v40  ;;  %v48_v48 = vld [vmem:[#allocation4 + $0x60] sm:$0xff]  ;;  %v49_v49 = vld [vmem:[#allocation4 + $0x68] sm:$0xff]  ;;  %v276_v50 = vadd.f32 %v65_v47, %v64_v46  ;;  %v84_v53 = vmax.f32 %v46_v40, %v47_v41  ;;  %v66_v54 = vld [vmem:[#allocation4 + $0xf0] sm:$0xff]  ;;  %v111_v60 = vmax.f32 %v64_v46, %v65_v47 }
  0x1d   :  { %v252_v51 = vadd.f32 %v49_v49, %v48_v48  ;;  %v67_v55 = vld [vmem:[#allocation4 + $0xf8] sm:$0xff]  ;;  %v50_v56 = vld [vmem:[#allocation4 + $0x70] sm:$0xff]  ;;  %v87_v61 = vmax.f32 %v48_v48, %v49_v49  ;;  %v387_v2 = vld [vmem:[%s1022_s1 + $0x8] sm:$0xff]  ;;  %v136_v39 = vshrl.u32 %v133_v31, 7  ;;  %vm179_vm7 = vcmask 458112  }
  0x1e   :  { %265 = vadd.xlane.f32.xlu1 %v264_v16  ;;  %v51_v57 = vld [vmem:[#allocation4 + $0x78] sm:$0xff]  ;;  %v279_v58 = vadd.f32 %v67_v55, %v66_v54  ;;  %v114_v62 = vmax.f32 %v66_v54, %v67_v55  ;;  %v388_v5 = vld [vmem:[%s1022_s1 + $0x10] sm:$0xff]  ;;  %v391_v10 = vld [vmem:[%s1022_s1 + $0x28] sm:$0xff]  ;;  %vm186_vm8 = vcmask 523712   ;;  %vm227_vm9 = vcmask 1041409  }
  0x1f   :  { %241 = vadd.xlane.f32.xlu0 %v240_v17  ;;  %v255_v59 = vadd.f32 %v51_v57, %v50_v56  ;;  %v90_v63 = vmax.f32 %v50_v56, %v51_v57  ;;  %v386_v1 = vld [vmem:[%s1022_s1] sm:$0xff]  ;;  %v389_v6 = vld [vmem:[%s1022_s1 + $0x18] sm:$0xff]  ;;  %v392_v12 = vld [vmem:[%s1022_s1 + $0x30] sm:$0xff]  ;;  %vm395_vm10 = vcmask 523264   ;;  %vm549_vm11 = vcmask 1043456  }
  0x20   :  { %v714_v3 = vpack.c.bf16 %v387_v2, %v386_v1  ;;  %v717_v7 = vpack.c.bf16 %v389_v6, %v388_v5  ;;  %v390_v9 = vld [vmem:[%s1022_s1 + $0x20] sm:$0xff]  ;;  %v393_v13 = vld [vmem:[%s1022_s1 + $0x38] sm:$0xff]  ;;  %vm545_vm12 = vcmask 31744  }
  0x21   :  { %v720_v11 = vpack.c.bf16 %v391_v10, %v390_v9  ;;  %v723_v14 = vpack.c.bf16 %v393_v13, %v392_v12 }
  0x22   :  { %73 = vmax.xlane.f32.xlu1 %v72_v18  ;;  %727 = vmatpush3.bf16.msra.mxu1 %v714_v3 }
  0x23   :  { %70 = vmax.xlane.f32.xlu0 %v69_v19  ;;  %715 = vmatpush3.bf16.msra.mxu0 %v714_v3 }
  0x24   :  { %728 = vmatprep.subr.bf16.mxu1 %v801_v4  ;;  %716 = vmatprep.subr.bf16.mxu0 %v801_v4 }
  0x26   :  { %97 = vmax.xlane.f32.xlu1 %v96_v20  ;;  %730 = vmatpush3.bf16.msra.mxu1 %v717_v7 }
  0x27   :  { %94 = vmax.xlane.f32.xlu0 %v93_v21  ;;  %718 = vmatpush3.bf16.msra.mxu0 %v717_v7 }
  0x28   :  { %731 = vmatprep.subr.bf16.mxu1 %v801_v4  ;;  %719 = vmatprep.subr.bf16.mxu0 %v801_v4 }
  0x2a   :  { %268 = vadd.xlane.f32.xlu1 %v267_v26  ;;  %733 = vmatpush3.bf16.msra.mxu1 %v720_v11 }
  0x2b   :  { %244 = vadd.xlane.f32.xlu0 %v243_v27  ;;  %721 = vmatpush3.bf16.msra.mxu0 %v720_v11 }
  0x2c   :  { %734 = vmatprep.subr.bf16.mxu1 %v801_v4  ;;  %722 = vmatprep.subr.bf16.mxu0 %v801_v4 }
  0x2e   :  { %100 = vmax.xlane.f32.xlu1 %v99_v28  ;;  %736 = vmatpush3.bf16.msra.mxu1 %v723_v14 }
  0x2f   :  { %76 = vmax.xlane.f32.xlu0 %v75_v29  ;;  %724 = vmatpush3.bf16.msra.mxu0 %v723_v14 }
  0x30   :  { %708 = vmatprep.subr.mxu0 %v800_v0 }
  0x32   :  { %271 = vadd.xlane.f32.xlu1 %v270_v34  ;;  %v134_v34 = vand.u32 127, %v133_v31 }
  0x33   :  { %247 = vadd.xlane.f32.xlu0 %v246_v35 }
  0x34   :  { %v146_v38 = vadd.s32 4294967280, %v134_v34  ;;  %v153_v40 = vadd.s32 4294967272, %v134_v34  ;;  %v160_v41 = vadd.s32 4294967264, %v134_v34  ;;  %v174_v47 = vadd.s32 4294967248, %v134_v34 }
  0x35   :  { %v909_v48 = vsub.s32 %v134_v34, %v136_v39 }
  0x36   :  { %103 = vmax.xlane.f32.xlu1 %v102_v36  ;;  %v139_v36 = vadd.s32 4294967288, %v134_v34  ;;  %v907_v46 = vsub.s32 %v146_v38, %v136_v39  ;;  %v911_v49 = vsub.s32 %v153_v40, %v136_v39  ;;  %v233_v38 = vld [vmem:[#allocation3] sm:$0x3] }
  0x37   :  { %79 = vmax.xlane.f32.xlu0 %v78_v37 }
  0x3a   :  { %274 = vadd.xlane.f32.xlu1 %v273_v42 }
  0x3b   :  { %250 = vadd.xlane.f32.xlu0 %v249_v43  ;;  %v903_v43 = vsub.s32 %v139_v36, %v136_v39 }
  0x3e   :  { %106 = vmax.xlane.f32.xlu1 %v105_v44  ;;  %v167_v44 = vadd.s32 4294967256, %v134_v34 }
  0x3f   :  { %82 = vmax.xlane.f32.xlu0 %v81_v45 }
  0x40   :  { %v916_v54 = vsub.s32 %v167_v44, %v136_v39 }
  0x42   :  { %277 = vadd.xlane.f32.xlu1 %v276_v50  ;;  %v181_v50 = vadd.s32 4294967240, %v134_v34 }
  0x43   :  { %253 = vadd.xlane.f32.xlu0 %v252_v51  ;;  %v913_v51 = vsub.s32 %v160_v41, %v136_v39 }
  0x46   :  { %109 = vmax.xlane.f32.xlu1 %v108_v52 }
  0x47   :  { %85 = vmax.xlane.f32.xlu0 %v84_v53 }
  0x4a   :  { %280 = vadd.xlane.f32.xlu1 %v279_v58  ;;  %v922_v58 = vsub.s32 %v174_v47, %v136_v39 }
  0x4b   :  { %256 = vadd.xlane.f32.xlu0 %v255_v59 }
  0x4e   :  { %112 = vmax.xlane.f32.xlu1 %v111_v60 }
  0x4f   :  { %88 = vmax.xlane.f32.xlu0 %v87_v61 }
  0x52   :  { %115 = vmax.xlane.f32.xlu1 %v114_v62  ;;  %v928_v62 = vsub.s32 %v181_v50, %v136_v39 }
  0x53   :  { %91 = vmax.xlane.f32.xlu0 %v90_v63 }
  0xa3   :  { %v260_v15 = vpop.xlane.xlu1 %259 }
  0xa4   :  { %v869_v16 = vpop.xlane.xlu0 %235  ;;  %v340_v59 = vrot.slane %v260_v15, %v909_v48 }
  0xa5   :  { %v301_v63 = vrot.slane %v869_v16, %v909_v48 }
  0xa7   :  { %v263_v17 = vpop.xlane.xlu1 %262 }
  0xa8   :  { %v871_v18 = vpop.xlane.xlu0 %238  ;;  %v344_v53 = vrot.slane %v263_v17, %v903_v43 }
  0xa9   :  { %v305_v56 = vrot.slane %v871_v18, %v903_v43 }
  0xaa   :  { %v345_v4 = vsel %vm144_vm2, %v344_v53, %v340_v59 }
  0xab   :  { %v873_v19 = vpop.xlane.xlu1 %265  ;;  %v306_v8 = vsel %vm144_vm2, %v305_v56, %v301_v63 }
  0xac   :  { %v875_v20 = vpop.xlane.xlu0 %241  ;;  %v349_v57 = vrot.slane %v873_v19, %v907_v46 }
  0xad   :  { %v310_v60 = vrot.slane %v875_v20, %v907_v46 }
  0xae   :  { %v350_v9 = vsel %vm151_vm3, %v349_v57, %v345_v4 }
  0xaf   :  { %v877_v21 = vpop.xlane.xlu1 %73  ;;  %v311_v12 = vsel %vm151_vm3, %v310_v60, %v306_v8 }
  0xb0   :  { %v879_v22 = vpop.xlane.xlu0 %70  ;;  %v143_v13 = vrot.slane %v877_v21, %v903_v43 }
  0xb1   :  { %v138_v16 = vrot.slane %v879_v22, %v909_v48 }
  0xb3   :  { %v881_v23 = vpop.xlane.xlu1 %97  ;;  %v145_v39 = vsel %vm144_vm2, %v143_v13, %v138_v16 }
  0xb4   :  { %v883_v24 = vpop.xlane.xlu0 %94  ;;  %v195_v17 = vrot.slane %v881_v23, %v903_v43 }
  0xb7   :  { %v269_v25 = vpop.xlane.xlu1 %268 }
  0xb8   :  { %v885_v26 = vpop.xlane.xlu0 %244  ;;  %v354_v61 = vrot.slane %v269_v25, %v911_v49  ;;  %v191_v25 = vrot.slane %v883_v24, %v909_v48 }
  0xb9   :  { %v315_v1 = vrot.slane %v885_v26, %v911_v49 }
  0xba   :  { %v355_v14 = vsel %vm158_vm4, %v354_v61, %v350_v9 }
  0xbb   :  { %v887_v27 = vpop.xlane.xlu1 %100  ;;  %v316_v18 = vsel %vm158_vm4, %v315_v1, %v311_v12 }
  0xbc   :  { %v889_v28 = vpop.xlane.xlu0 %76  ;;  %v200_v22 = vrot.slane %v887_v27, %v907_v46 }
  0xbf   :  { %v891_v29 = vpop.xlane.xlu1 %271 }
  0xc0   :  { %v893_v30 = vpop.xlane.xlu0 %247  ;;  %v359_v2 = vrot.slane %v891_v29, %v913_v51 }
  0xc1   :  { %v320_v5 = vrot.slane %v893_v30, %v913_v51 }
  0xc2   :  { %v360_v19 = vsel %vm165_vm5, %v359_v2, %v355_v14  ;;  %v68_v2 = vld [vmem:[#allocation2] sm:$0x3] }
  0xc3   :  { %v895_v32 = vpop.xlane.xlu1 %103  ;;  %v321_v21 = vsel %vm165_vm5, %v320_v5, %v316_v18 }
  0xc4   :  { %v897_v33 = vpop.xlane.xlu0 %79  ;;  %v205_v24 = vrot.slane %v895_v32, %v911_v49 }
  0xc5   :  { %v157_v27 = vrot.slane %v897_v33, %v911_v49 }
  0xc7   :  { %v275_v35 = vpop.xlane.xlu1 %274 }
  0xc8   :  { %v899_v37 = vpop.xlane.xlu0 %250  ;;  %v364_v6 = vrot.slane %v275_v35, %v916_v54  ;;  %v150_v35 = vrot.slane %v889_v28, %v907_v46  ;;  %v196_v28 = vsel %vm144_vm2, %v195_v17, %v191_v25 }
  0xc9   :  { %v325_v10 = vrot.slane %v899_v37, %v916_v54  ;;  %v201_v48 = vsel %vm151_vm3, %v200_v22, %v196_v28 }
  0xca   :  { %v365_v26 = vsel %vm172_vm6, %v364_v6, %v360_v19  ;;  %v152_v50 = vsel %vm151_vm3, %v150_v35, %v145_v39 }
  0xcb   :  { %v901_v42 = vpop.xlane.xlu1 %106  ;;  %v326_v23 = vsel %vm172_vm6, %v325_v10, %v321_v21 }
  0xcc   :  { %v905_v45 = vpop.xlane.xlu0 %82  ;;  %v210_v40 = vrot.slane %v901_v42, %v913_v51 }
  0xcd   :  { %v164_v32 = vrot.slane %v905_v45, %v913_v51  ;;  %v159_v45 = vsel %vm158_vm4, %v157_v27, %v152_v50 }
  0xcf   :  { %v278_v52 = vpop.xlane.xlu1 %277  ;;  %v166_v56 = vsel %vm165_vm5, %v164_v32, %v159_v45 }
  0xd0   :  { %v254_v55 = vpop.xlane.xlu0 %253  ;;  %v369_v11 = vrot.slane %v278_v52, %v922_v58  ;;  %v206_v52 = vsel %vm158_vm4, %v205_v24, %v201_v48 }
  0xd1   :  { %v330_v15 = vrot.slane %v254_v55, %v922_v58  ;;  %v211_v51 = vsel %vm165_vm5, %v210_v40, %v206_v52 }
  0xd2   :  { %v370_v31 = vsel %vm179_vm7, %v369_v11, %v365_v26 }
  0xd3   :  { %v110_v3 = vpop.xlane.xlu1 %109  ;;  %v331_v36 = vsel %vm179_vm7, %v330_v15, %v326_v23 }
  0xd4   :  { %v86_v7 = vpop.xlane.xlu0 %85  ;;  %v215_v44 = vrot.slane %v110_v3, %v916_v54 }
  0xd5   :  { %v171_v33 = vrot.slane %v86_v7, %v916_v54 }
  0xd6   :  { %v216_v54 = vsel %vm172_vm6, %v215_v44, %v211_v51 }
  0xd7   :  { %v281_v20 = vpop.xlane.xlu1 %280  ;;  %v173_v60 = vsel %vm172_vm6, %v171_v33, %v166_v56 }
  0xd8   :  { %v374_v29 = vrot.slane %v281_v20, %v928_v62  ;;  %v257_v30 = vpop.xlane.xlu0 %256 }
  0xd9   :  { %v335_v34 = vrot.slane %v257_v30, %v928_v62 }
  0xda   :  { %v375_v37 = vsel %vm186_vm8, %v374_v29, %v370_v31 }
  0xdb   :  { %v336_v41 = vsel %vm186_vm8, %v335_v34, %v331_v36  ;;  %v113_v43 = vpop.xlane.xlu1 %112 }
  0xdc   :  { %v376_v46 = vsel %vm227_vm9, %v375_v37, %v336_v41  ;;  %v89_v47 = vpop.xlane.xlu0 %88  ;;  %v220_v49 = vrot.slane %v113_v43, %v922_v58 }
  0xdd   :  { %v378_v42 = vadd.f32 %v376_v46, %v233_v38  ;;  %v178_v53 = vrot.slane %v89_v47, %v922_v58 }
  0xde   :  { %v221_v61 = vsel %vm179_vm7, %v220_v49, %v216_v54 }
  0xdf   :  { %v116_v55 = vpop.xlane.xlu1 %115  ;;  %379 = vst.msk [vmem:[#allocation3] sm:$0x3] %vm33_vm0, %v378_v42  ;;  %v180_v63 = vsel %vm179_vm7, %v178_v53, %v173_v60 }
  0xe0   :  { %v225_v57 = vrot.slane %v116_v55, %v928_v62  ;;  %v92_v59 = vpop.xlane.xlu0 %91 }
  0xe1   :  { %v185_v58 = vrot.slane %v92_v59, %v928_v62  ;;  %v394_v62 = vld [vmem:[%s1023_s2] sm:$0xf]  ;;  %s636_s2 = sshll.u32 %s804_s15, 4  ;;  %s637_s2 = int_to_ptr.vmem [resolvable:$true] %s636_s2 }
  0xe2   :  { %v226_v1 = vsel %vm186_vm8, %v225_v57, %v221_v61  ;;  %s771_s16 = scalar_lea.vmem %s637_s2, 32  ;;  %p776_p9 = scmp.lt.s32.totalorder %s637_s2, %s637_s2 }
  0xe3   :  { %v187_v3 = vsel %vm186_vm8, %v185_v58, %v180_v63  ;;  %p772_p8 = scmp.ne.s32.totalorder %s637_s2, %s771_s16  ;;  %p777_p10 = scmp.lt.s32.totalorder %s771_s16, %s771_s16 }
  0xe4   :  { %v228_v4 = vsel %vm227_vm9, %v226_v1, %v187_v3 }
  0xe5   :  { %v230_v5 = vmax.f32 %v68_v2, %v228_v4  ;;  %p778_p11 = por %p777_p10, %p776_p9 }
  0xe6   :  { %v384_v6 = vld [vmem:[#allocation3] sm:$0x3] }
  0xe7   :  { %232 = vst.msk [vmem:[#allocation2] sm:$0x3] %vm33_vm0, %v230_v5  ;;  %v385_v7 = vmul.f32 0.00390625, %v384_v6  ;;  %p779_p12 = pnand %p778_p11, %p772_p8 }
  0xe9   :  { %706 = vmatmul.mubr.msk.f32.vlgmr.msra.gmra.mrb[0].mxu1 %vm395_vm10, %v385_v7 }
  0xee   :  { %v383_v8 = vld [vmem:[#allocation2] sm:$0x3] }
  0xef   :  { %687 = vmatmul.mubr.msk.f32.vlgmr.msra.gmra.mrb[0].mxu0 %vm395_vm10, %v383_v8 }
  0xf0   :  { %710 = vmatprep.mubr.msk.f32.mxu0 %vm803_vm1, %v800_v0  ;;  %709 = vmatpush3.msk.msra.mxu0 %vm549_vm11, %v394_v62 }
 0x1bc   :  { %v539_v9 = vpop.f32.mrb[0].mxu1 }
 0x1bd   :  { %v707_v10 = vpop.f32.mrb[1].mxu1  ;;  %v543_v12 = vmax.f32 %v539_v9, 0.0 }
 0x1c2   :  { %v465_v11 = vpop.f32.mrb[0].mxu0 }
 0x1c3   :  { %v469_v13 = vmax.f32 %v465_v11, 0.0  ;;  %v688_v14 = vpop.f32.mrb[1].mxu0 }
 0x1c5   :  { %v544_v15 = vadd.f32 %v543_v12, %v469_v13 }
 0x1c7   :  { %711 = vmatmul.mubr.msk.f32.vlgmr.msra.gmra.mrb[2].mxu0 %vm545_vm12, %v544_v15 }
 0x29a   :  { %v619_v16 = vpop.f32.mrb[2].mxu0 }
 0x29b   :  { %v649_v17 = vmul.f32 -1.442695, %v619_v16  ;;  %v712_v18 = vpop.f32.mrb[3].mxu0 }
 0x29d   :  { %745 = vpow2.f32 %v649_v17 }
 0x2a7   :  { %v746_v0 = vpop.eup %745 }
 0x2a8   :  { %v626_v19 = vadd.f32 1.0, %v746_v0 }
 0x2aa   :  { %747 = vrcp.f32 %v626_v19 }
 0x2b4   :  { %v748_v20 = vpop.eup %747 }
 0x2b5   :  { %629 = vst.msk [vmem:[#allocation7] sm:$0x3] %vm33_vm0, %v748_v20 }
 0x2b6   :  { %782 = shalt.err (!%p779_p12)
}
 0x2b7   :  { %s783_s19 = scalar_lea.hbm %s1024_s3, 32 }
 0x2b8   :  { %p784_p13 = scmp.ne.s32.totalorder %s1024_s3, %s783_s19  ;;  %p787_p0 = scmp.lt.u32.totalorder %s783_s19, %s1024_s3 }
 0x2ba   :  { %p789_p1 = pnand %p787_p0, %p784_p13 }
 0x2bc   :  { %792 = shalt.err (!%p789_p1)
}
 0x2bd   :  { %639 = dma.vmem_to_hbm [thread:$0]  %s637_s2, 32, %s1024_s3, [#allocation6]  }
 0x2be   :  { %795 = dma.done.wait [#allocation6], 32  }
 0x2bf   :  { %796 = vsyncadd [#allocation6], 4294967264 }
 0x2c0   :  { %643 = vsyncpa [#allocation5], 1 }
 0x2c1   :  { %644 = vsyncpa [#allocation6], 1 }

</bundles_post_ra>
